<compile_context>
chip_gen: v7x
topology: tpu7x:2x2x1
jax: 0.10.0
libtpu: 0.0.40
codegen_flags: <defaults>
</compile_context>

<pallas_src>
import functools

import jax
import jax.numpy as jnp
from jax.experimental import pallas as pl
from jax.experimental.pallas import tpu as pltpu

HIDDEN = 256


def _round_up(x, m):
    return (x + m - 1) // m * m


def _actor_kernel(hidden, state_dim, s_pad, a_pad,
                  ma_ref, state_ref, w1_ref, w23_ref, b_ref,
                  out_ref):
    H = hidden

    # state_ref block is (TB, s_pad) over a [B, state_dim] array: lanes
    # >= state_dim (and rows past B in the last tile) hold uninitialized VMEM.
    # Zero the K padding explicitly (VMEM-only pad; kills NaN-garbage risk).
    x = state_ref[...]                                        # [TB, s_pad] f32
    if s_pad > state_dim:
        lane = jax.lax.broadcasted_iota(jnp.int32, x.shape, 1)
        x = jnp.where(lane < state_dim, x, 0.0)

    # Layer 1: relu(x @ W1 + b1)   (bf16 MXU matmul, f32 accumulate/epilogue)
    h = jnp.dot(x.astype(w1_ref.dtype), w1_ref[...],
                preferred_element_type=jnp.float32)
    h = jnp.maximum(h + b_ref[:, 0:H], 0.0)

    # Layer 2: relu(h @ W2 + b2)   (bf16 cast feeds the dot directly -> single
    # VPU pass over h for bias+ReLU+cast)
    h = jnp.dot(h.astype(w23_ref.dtype), w23_ref[:, 0:H],
                preferred_element_type=jnp.float32)
    h = jnp.maximum(h + b_ref[:, H:2 * H], 0.0)

    # Layer 3: max_action * tanh(h @ W3 + b3)
    y = jnp.dot(h.astype(w23_ref.dtype), w23_ref[:, H:H + a_pad],
                preferred_element_type=jnp.float32)
    y = jnp.tanh(y + b_ref[:, 2 * H:2 * H + a_pad])
    out_ref[...] = (ma_ref[0] * y).astype(out_ref.dtype)


def pack_actor_params(params, state_dim, action_dim, hidden=HIDDEN,
                      weight_dtype=jnp.bfloat16):
    """One-time packing: pad weights to lane quanta, cast, fuse slabs.

    Use weight_dtype=jnp.float32 for exact f32 parity with the PyTorch Actor.
    """
    s_pad = _round_up(max(state_dim, 1), 128)
    a_pad = _round_up(max(action_dim, 1), 128)

    w1 = jnp.pad(params["w1"].astype(weight_dtype),
                 ((0, s_pad - state_dim), (0, 0)))             # [S_pad, H]
    w2 = params["w2"].astype(weight_dtype)                     # [H, H]
    w3 = jnp.pad(params["w3"].astype(weight_dtype),
                 ((0, 0), (0, a_pad - action_dim)))            # [H, A_pad]
    w23 = jnp.concatenate([w2, w3], axis=1)                    # [H, H + A_pad]

    b3 = jnp.pad(params["b3"].astype(jnp.float32),
                 ((0, 0), (0, a_pad - action_dim)))
    bias = jnp.concatenate(
        [params["b1"].astype(jnp.float32),
         params["b2"].astype(jnp.float32), b3], axis=1)        # [1, 2H + A_pad]

    return {"w1": w1, "w23": w23, "bias": bias,
            "state_dim": state_dim, "action_dim": action_dim,
            "hidden": hidden, "s_pad": s_pad, "a_pad": a_pad}


def actor_forward(state, packed, max_action):
    """Fused 3-layer MLP forward on pre-packed params.

    state: [B, state_dim] float32. Returns [B, action_dim] float32.
    Intended to be called under jax.jit so the scalar asarray and the final
    lane slice fuse with surrounding ops.
    """
    B, state_dim = state.shape
    assert state_dim == packed["state_dim"]
    H = packed["hidden"]
    s_pad, a_pad = packed["s_pad"], packed["a_pad"]
    action_dim = packed["action_dim"]

    # Batch tiling:
    #  * tiny rollout batches (B <= 16): one sublane-aligned tile;
    #  * otherwise >= 2 tiles (megacore split on v7x), <= 512 rows/tile
    #    (sweep 512-1024 per generation for very large batches; VMEM footprint
    #    is tiny either way).
    if B <= 16:
        TB = max(8, _round_up(B, 8))
    else:
        TB = min(512, _round_up(pl.cdiv(B, 2), 8))
    n_tiles = pl.cdiv(B, TB)

    ma = jnp.asarray([max_action], dtype=jnp.float32)
    w1, w23, bias = packed["w1"], packed["w23"], packed["bias"]

    flops = 2 * B * (s_pad * H + H * H + H * a_pad)
    bytes_accessed = (state.size * state.dtype.itemsize      # unpadded state
                      + w1.size * w1.dtype.itemsize
                      + w23.size * w23.dtype.itemsize
                      + bias.size * 4
                      + B * a_pad * 4)                        # lane-dense output
    cost = pl.CostEstimate(flops=int(flops),
                           transcendentals=int(B * a_pad),
                           bytes_accessed=int(bytes_accessed))

    kernel = functools.partial(_actor_kernel, H, state_dim, s_pad, a_pad)

    out = pl.pallas_call(
        kernel,
        out_shape=jax.ShapeDtypeStruct((B, a_pad), jnp.float32),
        grid_spec=pltpu.PrefetchScalarGridSpec(
            num_scalar_prefetch=0,
            grid=(n_tiles,),
            in_specs=[
                pl.BlockSpec(memory_space=pltpu.MemorySpace.SMEM),   # max_action
                # State streams unpadded; (TB, s_pad) over [B, state_dim] is a
                # partial block, extra lanes are zeroed inside the kernel.
                pl.BlockSpec((TB, s_pad), lambda i: (i, 0)),
                # Resident operands: block index never changes across the grid.
                pl.BlockSpec((s_pad, H), lambda i: (0, 0)),          # W1
                pl.BlockSpec((H, H + a_pad), lambda i: (0, 0)),      # W2|W3
                pl.BlockSpec((1, 2 * H + a_pad), lambda i: (0, 0)),  # b1|b2|b3
            ],
            out_specs=pl.BlockSpec((TB, a_pad), lambda i: (i, 0)),
        ),
        compiler_params=pltpu.CompilerParams(
            dimension_semantics=("parallel",)),
        cost_estimate=cost,
    )(ma, state.astype(jnp.float32), w1, w23, bias)

    # Lane slice only; batch dim is already exact.  Fuses under jax.jit.
    return out[:, :action_dim]


def init_actor_params(key, state_dim, action_dim, hidden=HIDDEN):
    """Deterministic synthetic init (PyTorch Linear-like uniform fan-in scaling).

    Weights are stored transposed: [in_features, out_features]."""
    k1, k2, k3, k4, k5, k6 = jax.random.split(key, 6)

    def lin(kw, kb, fan_in, fan_out):
        bound = 1.0 / jnp.sqrt(fan_in)
        w = jax.random.uniform(kw, (fan_in, fan_out), jnp.float32, -bound, bound)
        b = jax.random.uniform(kb, (1, fan_out), jnp.float32, -bound, bound)
        return w, b

    w1, b1 = lin(k1, k2, state_dim, hidden)
    w2, b2 = lin(k3, k4, hidden, hidden)
    w3, b3 = lin(k5, k6, hidden, action_dim)
    return {"w1": w1, "b1": b1, "w2": w2, "b2": b2, "w3": w3, "b3": b3}


def actor_forward_ref(state, params, max_action, weight_dtype=jnp.float32):
    """Pure-JAX reference; weight_dtype=bf16 mimics the kernel's MXU numerics."""
    def lin(x, w, b):
        return jnp.dot(x.astype(weight_dtype), w.astype(weight_dtype),
                       preferred_element_type=jnp.float32) + b
    h = jnp.maximum(lin(state, params["w1"], params["b1"]), 0.0)
    h = jnp.maximum(lin(h, params["w2"], params["b2"]), 0.0)
    return max_action * jnp.tanh(lin(h, params["w3"], params["b3"]))


if __name__ == "__main__":
    key = jax.random.PRNGKey(0)
    k_param, k_state = jax.random.split(key)

    batch = 2
    state_dim = 17      # e.g. HalfCheetah observation dim
    action_dim = 6
    max_action = 1.0

    params = init_actor_params(k_param, state_dim, action_dim)
    packed = pack_actor_params(params, state_dim, action_dim)
    state = jax.random.normal(k_state, (batch, state_dim), dtype=jnp.float32)

    # Jit the whole wrapper so pre/post glue fuses with the kernel call.
    fwd = jax.jit(functools.partial(actor_forward,
                                    packed=packed, max_action=max_action))

    out = jax.block_until_ready(fwd(state))
    assert out.shape == (batch, action_dim)

    # Reference with matching bf16-weight / f32-accumulate numerics.
    ref_bf16 = actor_forward_ref(state, params, max_action,
                                 weight_dtype=jnp.bfloat16)
    assert jnp.allclose(out, ref_bf16, atol=1e-4, rtol=1e-4), \
        "mismatch vs bf16-matched JAX reference"

    # Sanity check against the full-f32 PyTorch-equivalent forward.
    ref_f32 = actor_forward_ref(state, params, max_action,
                                weight_dtype=jnp.float32)
    assert jnp.allclose(out, ref_f32, atol=5e-2, rtol=5e-2), \
        "mismatch vs f32 JAX reference"

    # Larger batch exercises the multi-tile "parallel" grid and the partial
    # last batch tile (300 rows -> 2 tiles of 152).
    big_state = jax.random.normal(key, (300, state_dim), dtype=jnp.float32)
    big_out = jax.block_until_ready(fwd(big_state))
    assert big_out.shape == (300, action_dim)
    big_ref = actor_forward_ref(big_state, params, max_action,
                                weight_dtype=jnp.bfloat16)
    assert jnp.allclose(big_out, big_ref, atol=2e-4, rtol=2e-4), \
        "mismatch vs bf16-matched JAX reference (large batch)"

    print("KERNEL_OK")
</pallas_src>

<mosaic_0001>
module attributes {stable_mosaic.version = 11 : i64} {
  func.func @_actor_kernel(%arg0: i32, %arg1: memref<1xf32, #tpu.memory_space<smem>>, %arg2: memref<8x128xf32, #tpu.memory_space<vmem>>, %arg3: memref<128x256xbf16, #tpu.memory_space<vmem>>, %arg4: memref<256x384xbf16, #tpu.memory_space<vmem>>, %arg5: memref<1x640xf32, #tpu.memory_space<vmem>>, %arg6: memref<8x128xf32, #tpu.memory_space<vmem>>) attributes {dimension_semantics = [#tpu.dimension_semantics<parallel>], iteration_bounds = array<i64: 1>, scalar_prefetch = 0 : i64, scratch_operands = 0 : i64, tpu.core_type = #tpu.core_type<tc>, window_params = [{transform_indices = @transform_0, window_bounds = array<i64: 1>}, {transform_indices = @transform_1, window_bounds = array<i64: 8, 128>}, {pipeline_mode = #tpu.pipeline_mode<synchronous>, transform_indices = @transform_2, window_bounds = array<i64: 128, 256>}, {pipeline_mode = #tpu.pipeline_mode<synchronous>, transform_indices = @transform_3, window_bounds = array<i64: 256, 384>}, {pipeline_mode = #tpu.pipeline_mode<synchronous>, transform_indices = @transform_4, window_bounds = array<i64: 1, 640>}, {transform_indices = @transform_5, window_bounds = array<i64: 8, 128>}]} {
    %c0 = arith.constant 0 : index
    %c0_0 = arith.constant 0 : index
    %0 = vector.load %arg2[%c0, %c0_0] : memref<8x128xf32, #tpu.memory_space<vmem>>, vector<8x128xf32>
    %1 = tpu.iota {dimensions = array<i32: 1>} : vector<8x128xi32>
    %c17_i32 = arith.constant 17 : i32
    %2 = vector.broadcast %c17_i32 : i32 to vector<8x128xi32>
    %3 = arith.cmpi slt, %1, %2 : vector<8x128xi32>
    %cst = arith.constant 0.000000e+00 : f32
    %4 = vector.broadcast %cst : f32 to vector<8x128xf32>
    %5 = arith.select %3, %0, %4 : vector<8x128xi1>, vector<8x128xf32>
    %6 = arith.truncf %5 : vector<8x128xf32> to vector<8x128xbf16>
    %c0_1 = arith.constant 0 : index
    %c0_2 = arith.constant 0 : index
    %7 = vector.load %arg3[%c0_1, %c0_2] : memref<128x256xbf16, #tpu.memory_space<vmem>>, vector<128x256xbf16>
    %cst_3 = arith.constant dense<0.000000e+00> : vector<8x256xf32>
    %8 = tpu.matmul %6, %7, %cst_3 {dimension_numbers = #tpu.dot_dimension_numbers<[1], [0], [0], [1], [0, 0, 1, 1], [], []>} : vector<8x128xbf16>, vector<128x256xbf16>, vector<8x256xf32> -> vector<8x256xf32>
    %c0_4 = arith.constant 0 : index
    %c0_5 = arith.constant 0 : index
    %9 = vector.load %arg5[%c0_4, %c0_5] : memref<1x640xf32, #tpu.memory_space<vmem>>, vector<1x256xf32>
    %10 = vector.broadcast %9 : vector<1x256xf32> to vector<8x256xf32>
    %11 = arith.addf %8, %10 : vector<8x256xf32>
    %cst_6 = arith.constant 0.000000e+00 : f32
    %12 = vector.broadcast %cst_6 : f32 to vector<8x256xf32>
    %13 = arith.maximumf %11, %12 : vector<8x256xf32>
    %14 = arith.truncf %13 : vector<8x256xf32> to vector<8x256xbf16>
    %c0_7 = arith.constant 0 : index
    %c0_8 = arith.constant 0 : index
    %15 = vector.load %arg4[%c0_7, %c0_8] : memref<256x384xbf16, #tpu.memory_space<vmem>>, vector<256x256xbf16>
    %cst_9 = arith.constant dense<0.000000e+00> : vector<8x256xf32>
    %16 = tpu.matmul %14, %15, %cst_9 {dimension_numbers = #tpu.dot_dimension_numbers<[1], [0], [0], [1], [0, 0, 1, 1], [], []>} : vector<8x256xbf16>, vector<256x256xbf16>, vector<8x256xf32> -> vector<8x256xf32>
    %c0_10 = arith.constant 0 : index
    %c256 = arith.constant 256 : index
    %17 = vector.load %arg5[%c0_10, %c256] : memref<1x640xf32, #tpu.memory_space<vmem>>, vector<1x256xf32>
    %18 = vector.broadcast %17 : vector<1x256xf32> to vector<8x256xf32>
    %19 = arith.addf %16, %18 : vector<8x256xf32>
    %cst_11 = arith.constant 0.000000e+00 : f32
    %20 = vector.broadcast %cst_11 : f32 to vector<8x256xf32>
    %21 = arith.maximumf %19, %20 : vector<8x256xf32>
    %22 = arith.truncf %21 : vector<8x256xf32> to vector<8x256xbf16>
    %c0_12 = arith.constant 0 : index
    %c256_13 = arith.constant 256 : index
    %23 = vector.load %arg4[%c0_12, %c256_13] : memref<256x384xbf16, #tpu.memory_space<vmem>>, vector<256x128xbf16>
    %cst_14 = arith.constant dense<0.000000e+00> : vector<8x128xf32>
    %24 = tpu.matmul %22, %23, %cst_14 {dimension_numbers = #tpu.dot_dimension_numbers<[1], [0], [0], [1], [0, 0, 1, 1], [], []>} : vector<8x256xbf16>, vector<256x128xbf16>, vector<8x128xf32> -> vector<8x128xf32>
    %c0_15 = arith.constant 0 : index
    %c512 = arith.constant 512 : index
    %25 = vector.load %arg5[%c0_15, %c512] : memref<1x640xf32, #tpu.memory_space<vmem>>, vector<1x128xf32>
    %26 = vector.broadcast %25 : vector<1x128xf32> to vector<8x128xf32>
    %27 = arith.addf %24, %26 : vector<8x128xf32>
    %28 = math.tanh %27 : vector<8x128xf32>
    %c0_16 = arith.constant 0 : index
    %29 = memref.load %arg1[%c0_16] : memref<1xf32, #tpu.memory_space<smem>>
    %30 = vector.broadcast %29 : f32 to vector<8x128xf32>
    %31 = arith.mulf %30, %28 : vector<8x128xf32>
    %c0_17 = arith.constant 0 : index
    %c0_18 = arith.constant 0 : index
    %32 = vector.load %arg6[%c0_17, %c0_18] : memref<8x128xf32, #tpu.memory_space<vmem>>, vector<8x128xf32>
    tpu.vector_store %arg6[%c0_17, %c0_18], %31 {strides = array<i32>} : memref<8x128xf32, #tpu.memory_space<vmem>>, vector<8x128xf32>,
    return
  }
  func.func @transform_0(%arg0: i32) -> i32 {
    %c0_i32 = arith.constant 0 : i32
    %c0_i32_0 = arith.constant 0 : i32
    return %c0_i32 : i32
  }
  func.func @transform_1(%arg0: i32) -> (i32, i32) {
    %c0_i32 = arith.constant 0 : i32
    %c0_i32_0 = arith.constant 0 : i32
    return %arg0, %c0_i32 : i32, i32
  }
  func.func @transform_2(%arg0: i32) -> (i32, i32) {
    %c0_i32 = arith.constant 0 : i32
    %c0_i32_0 = arith.constant 0 : i32
    %c0_i32_1 = arith.constant 0 : i32
    return %c0_i32, %c0_i32_0 : i32, i32
  }
  func.func @transform_3(%arg0: i32) -> (i32, i32) {
    %c0_i32 = arith.constant 0 : i32
    %c0_i32_0 = arith.constant 0 : i32
    %c0_i32_1 = arith.constant 0 : i32
    return %c0_i32, %c0_i32_0 : i32, i32
  }
  func.func @transform_4(%arg0: i32) -> (i32, i32) {
    %c0_i32 = arith.constant 0 : i32
    %c0_i32_0 = arith.constant 0 : i32
    %c0_i32_1 = arith.constant 0 : i32
    return %c0_i32, %c0_i32_0 : i32, i32
  }
  func.func @transform_5(%arg0: i32) -> (i32, i32) {
    %c0_i32 = arith.constant 0 : i32
    %c0_i32_0 = arith.constant 0 : i32
    return %arg0, %c0_i32 : i32, i32
  }
}

</mosaic_0001>

<bundles_post_ra>
// kernel: actor_forward.1
= control target key start
LH: loop header
LB: loop body
LE: loop exit
PB: predicated region body
PF: predicated region fallthrough
CT: control target
= control target key end

     0   :  { %11 = vsyncpa [#allocation4], 0  ;;  %v835_v2 = vmov 0   ;;  %v24_v17 = vlaneseq  ;;  %s1090_s0 = inlined_call_operand.<no memory space> [shape: f32[1], index: 0, kind: input, shape index: {}]   ;;  %s1091_s1 = inlined_call_operand.vmem [shape: f32[2,17], index: 1, kind: input, shape index: {}]   ;;  %s1092_s2 = inlined_call_operand.vmem [shape: bf16[128,256], index: 2, kind: input, shape index: {}]   ;;  %s1093_s3 = inlined_call_operand.vmem [shape: bf16[256,384], index: 3, kind: input, shape index: {}]   ;;  %s1094_s4 = inlined_call_operand.vmem [shape: f32[1,640], index: 4, kind: input, shape index: {}]   ;;  %s1095_s5 = inlined_call_operand.hbm [shape: f32[2,128], index: 5, kind: output, shape index: {}]  }
   0x1   :  { %v721_v0 = vld [vmem:[%s1092_s2 + $0x4] ss:$8 sps:$4 sm:$0xff]   ;;  %v723_v1 = vld [vmem:[%s1092_s2] ss:$8 sps:$4 sm:$0xff]   ;;  %169 = vmatprep.mubr.bf16.mxu0 %v835_v2  ;;  %v724_v3 = vld [vmem:[%s1092_s2 + $0x14] ss:$8 sps:$4 sm:$0xff]  }
   0x2   :  { %137 = vmatprep.subr.bf16.mxu0 %v721_v0  ;;  %v726_v4 = vld [vmem:[%s1092_s2 + $0x10] ss:$8 sps:$4 sm:$0xff]   ;;  %v727_v5 = vld [vmem:[%s1092_s2 + $0x24] ss:$8 sps:$4 sm:$0xff]   ;;  %v729_v6 = vld [vmem:[%s1092_s2 + $0x20] ss:$8 sps:$4 sm:$0xff]  }
   0x3   :  { %138 = vmatpush1.bf16.msra.mxu0 %v723_v1  ;;  %v730_v7 = vld [vmem:[%s1092_s2 + $0x34] ss:$8 sps:$4 sm:$0xff]   ;;  %v732_v8 = vld [vmem:[%s1092_s2 + $0x30] ss:$8 sps:$4 sm:$0xff]   ;;  %v733_v9 = vld [vmem:[%s1092_s2 + $0x44] ss:$8 sps:$4 sm:$0xff]  }
   0x4   :  { %139 = vmatprep.subr.bf16.mxu0 %v724_v3  ;;  %v745_v10 = vld [vmem:[%s1093_s3 + $0x4] ss:$12 sps:$4 sm:$0xff]   ;;  %v747_v11 = vld [vmem:[%s1093_s3] ss:$12 sps:$4 sm:$0xff]   ;;  %v748_v12 = vld [vmem:[%s1093_s3 + $0x1c] ss:$12 sps:$4 sm:$0xff]  }
   0x5   :  { %386 = vmatprep.subr.bf16.mxu1 %v745_v10  ;;  %v750_v13 = vld [vmem:[%s1093_s3 + $0x18] ss:$12 sps:$4 sm:$0xff]   ;;  %v735_v14 = vld [vmem:[%s1092_s2 + $0x40] ss:$8 sps:$4 sm:$0xff]   ;;  %v736_v16 = vld [vmem:[%s1092_s2 + $0x54] ss:$8 sps:$4 sm:$0xff]  }
   0x6   :  { %387 = vmatpush1.bf16.msra.mxu1 %v747_v11  ;;  %v751_v15 = vld [vmem:[%s1093_s3 + $0x34] ss:$12 sps:$4 sm:$0xff]   ;;  %v753_v18 = vld [vmem:[%s1093_s3 + $0x30] ss:$12 sps:$4 sm:$0xff]   ;;  %v754_v20 = vld [vmem:[%s1093_s3 + $0x4c] ss:$12 sps:$4 sm:$0xff]  }
   0x7   :  { %140 = vmatpush1.bf16.msra.mxu0 %v726_v4  ;;  %388 = vmatprep.subr.bf16.mxu1 %v748_v12  ;;  %v738_v19 = vld [vmem:[%s1092_s2 + $0x50] ss:$8 sps:$4 sm:$0xff]   ;;  %v739_v21 = vld [vmem:[%s1092_s2 + $0x64] ss:$8 sps:$4 sm:$0xff]   ;;  %v25_v22 = vand.u32 127, %v24_v17  ;;  %v48_v1 = vshrl.u32 %v24_v17, 7 }
   0x8   :  { %141 = vmatprep.subr.bf16.mxu0 %v727_v5  ;;  %v756_v23 = vld [vmem:[%s1093_s3 + $0x48] ss:$12 sps:$4 sm:$0xff]   ;;  %v757_v25 = vld [vmem:[%s1093_s3 + $0x64] ss:$12 sps:$4 sm:$0xff]   ;;  %v759_v28 = vld [vmem:[%s1093_s3 + $0x60] ss:$12 sps:$4 sm:$0xff]  }
   0x9   :  { %v741_v24 = vld [vmem:[%s1092_s2 + $0x60] ss:$8 sps:$4 sm:$0xff]   ;;  %v742_v26 = vld [vmem:[%s1092_s2 + $0x74] ss:$8 sps:$4 sm:$0xff]   ;;  %vm26_vm0 = vcmp.lt.s32.totalorder %v25_v22, 17  ;;  %v49_v2 = vsub.s32 0, %v48_v1 }
   0xa   :  { %389 = vmatpush1.bf16.msra.mxu1 %v750_v13  ;;  %v744_v27 = vld [vmem:[%s1092_s2 + $0x70] ss:$8 sps:$4 sm:$0xff]   ;;  %v23_v29 = vld [vmem:[%s1091_s1] sm:$0xff]  ;;  %v760_v30 = vld [vmem:[%s1093_s3 + $0x7c] ss:$12 sps:$4 sm:$0xff]   ;;  %v53_v4 = vsub.s32 1, %v48_v1 }
   0xb   :  { %142 = vmatpush1.bf16.msra.mxu0 %v729_v6  ;;  %390 = vmatprep.subr.bf16.mxu1 %v751_v15  ;;  %vm643_vm1 = vmpackc.low %vm26_vm0, %vm26_vm0  ;;  %v762_v31 = vld [vmem:[%s1093_s3 + $0x78] ss:$12 sps:$4 sm:$0xff]   ;;  %v763_v32 = vld [vmem:[%s1093_s3 + $0x94] ss:$12 sps:$4 sm:$0xff]   ;;  %v644_v33 = vpack.c.bf16 %v23_v29, %v23_v29 }
   0xc   :  { %143 = vmatprep.subr.bf16.mxu0 %v730_v7  ;;  %v765_v34 = vld [vmem:[%s1093_s3 + $0x90] ss:$12 sps:$4 sm:$0xff]   ;;  %v766_v35 = vld [vmem:[%s1093_s3 + $0xac] ss:$12 sps:$4 sm:$0xff]   ;;  %v768_v36 = vld [vmem:[%s1093_s3 + $0xa8] ss:$12 sps:$4 sm:$0xff]  }
   0xd   :  { %v769_v37 = vld [vmem:[%s1093_s3 + $0xc4] ss:$12 sps:$4 sm:$0xff]   ;;  %v771_v38 = vld [vmem:[%s1093_s3 + $0xc0] ss:$12 sps:$4 sm:$0xff]   ;;  %v772_v39 = vld [vmem:[%s1093_s3 + $0xdc] ss:$12 sps:$4 sm:$0xff]  }
   0xe   :  { %391 = vmatpush1.bf16.msra.mxu1 %v753_v18  ;;  %v774_v40 = vld [vmem:[%s1093_s3 + $0xd8] ss:$12 sps:$4 sm:$0xff]   ;;  %v775_v41 = vld [vmem:[%s1093_s3 + $0xf4] ss:$12 sps:$4 sm:$0xff]   ;;  %v777_v42 = vld [vmem:[%s1093_s3 + $0xf0] ss:$12 sps:$4 sm:$0xff]  }
   0xf   :  { %144 = vmatpush1.bf16.msra.mxu0 %v732_v8  ;;  %392 = vmatprep.subr.bf16.mxu1 %v754_v20  ;;  %v778_v43 = vld [vmem:[%s1093_s3 + $0x10c] ss:$12 sps:$4 sm:$0xff]   ;;  %v780_v44 = vld [vmem:[%s1093_s3 + $0x108] ss:$12 sps:$4 sm:$0xff]   ;;  %v781_v45 = vld [vmem:[%s1093_s3 + $0x124] ss:$12 sps:$4 sm:$0xff]  }
  0x10   :  { %145 = vmatprep.subr.bf16.mxu0 %v733_v9  ;;  %v783_v46 = vld [vmem:[%s1093_s3 + $0x120] ss:$12 sps:$4 sm:$0xff]   ;;  %v784_v47 = vld [vmem:[%s1093_s3 + $0x13c] ss:$12 sps:$4 sm:$0xff]   ;;  %v786_v48 = vld [vmem:[%s1093_s3 + $0x138] ss:$12 sps:$4 sm:$0xff]  }
  0x11   :  { %v787_v49 = vld [vmem:[%s1093_s3 + $0x154] ss:$12 sps:$4 sm:$0xff]   ;;  %v789_v50 = vld [vmem:[%s1093_s3 + $0x150] ss:$12 sps:$4 sm:$0xff]   ;;  %v790_v51 = vld [vmem:[%s1093_s3 + $0x16c] ss:$12 sps:$4 sm:$0xff]  }
  0x12   :  { %393 = vmatpush1.bf16.msra.mxu1 %v756_v23  ;;  %v792_v52 = vld [vmem:[%s1093_s3 + $0x168] ss:$12 sps:$4 sm:$0xff]   ;;  %v795_v55 = vld [vmem:[%s1093_s3 + $0xe0] ss:$12 sps:$4 sm:$0xff]   ;;  %v797_v57 = vld [vmem:[%s1093_s3 + $0xf8] ss:$12 sps:$4 sm:$0xff]  }
  0x13   :  { %146 = vmatpush1.bf16.msra.mxu0 %v735_v14  ;;  %394 = vmatprep.subr.bf16.mxu1 %v757_v25  ;;  %v793_v53 = vld [vmem:[%s1093_s3 + $0xc8] ss:$12 sps:$4 sm:$0xff]   ;;  %v796_v56 = vld [vmem:[%s1093_s3 + $0x20] ss:$12 sps:$4 sm:$0xff]   ;;  %v798_v58 = vld [vmem:[%s1093_s3 + $0x38] ss:$12 sps:$4 sm:$0xff]  }
  0x14   :  { %147 = vmatprep.subr.bf16.mxu0 %v736_v16  ;;  %v794_v54 = vld [vmem:[%s1093_s3 + $0x8] ss:$12 sps:$4 sm:$0xff]   ;;  %v799_v59 = vld [vmem:[%s1093_s3 + $0x110] ss:$12 sps:$4 sm:$0xff]   ;;  %v803_v63 = vld [vmem:[%s1093_s3 + $0x140] ss:$12 sps:$4 sm:$0xff]  }
  0x15   :  { %v800_v60 = vld [vmem:[%s1093_s3 + $0x50] ss:$12 sps:$4 sm:$0xff]   ;;  %v801_v61 = vld [vmem:[%s1093_s3 + $0x128] ss:$12 sps:$4 sm:$0xff]   ;;  %v804_v0 = vld [vmem:[%s1093_s3 + $0x80] ss:$12 sps:$4 sm:$0xff]  }
  0x16   :  { %395 = vmatpush1.bf16.msra.mxu1 %v759_v28  ;;  %v802_v62 = vld [vmem:[%s1093_s3 + $0x68] ss:$12 sps:$4 sm:$0xff]   ;;  %v45_v3 = vld [vmem:[%s1094_s4] sm:$0x3]  ;;  %v805_v17 = vld [vmem:[%s1093_s3 + $0x158] ss:$12 sps:$4 sm:$0xff]  }
  0x17   :  { %148 = vmatpush1.bf16.msra.mxu0 %v738_v19  ;;  %396 = vmatprep.subr.bf16.mxu1 %v760_v30  ;;  %v50_v5 = vrot.slane %v45_v3, %v49_v2  ;;  %v54_v6 = vrot.slane %v45_v3, %v53_v4  ;;  %v806_v18 = vld [vmem:[%s1093_s3 + $0x98] ss:$12 sps:$4 sm:$0xff]   ;;  %v807_v19 = vld [vmem:[%s1093_s3 + $0x170] ss:$12 sps:$4 sm:$0xff]  }
  0x18   :  { %149 = vmatprep.subr.bf16.mxu0 %v739_v21  ;;  %v808_v20 = vld [vmem:[%s1093_s3 + $0xb0] ss:$12 sps:$4 sm:$0xff]   ;;  %v214_v21 = vld [vmem:[%s1094_s4 + $0x2] sm:$0x3] }
  0x19   :  { %v219_v22 = vrot.slane %v214_v21, %v49_v2  ;;  %v223_v23 = vrot.slane %v214_v21, %v53_v4 }
  0x1a   :  { %397 = vmatpush1.bf16.msra.mxu1 %v762_v31 }
  0x1b   :  { %150 = vmatpush1.bf16.msra.mxu0 %v741_v24  ;;  %398 = vmatprep.subr.bf16.mxu1 %v763_v32 }
  0x1c   :  { %151 = vmatprep.subr.bf16.mxu0 %v742_v26 }
  0x1e   :  { %399 = vmatpush1.bf16.msra.mxu1 %v765_v34 }
  0x1f   :  { %152 = vmatpush1.bf16.msra.mxu0 %v744_v27  ;;  %400 = vmatprep.subr.bf16.mxu1 %v766_v35  ;;  %v678_v35 = vld [vmem:[%s1094_s4 + $0x4] ss:$0 sm:$0xff] }
  0x20   :  { %695 = vmatprep.subr.bf16.mxu0 %v793_v53 }
  0x22   :  { %645 = vmatmul.mubr.msk.bf16.vlgmr.msra.gmra.mrb[0].mxu0 %vm643_vm1, %v644_v33  ;;  %401 = vmatpush1.bf16.msra.mxu1 %v768_v36 }
  0x23   :  { %402 = vmatprep.subr.bf16.mxu1 %v769_v37  ;;  %696 = vmatpush3.bf16.msra.mxu0 %v794_v54 }
  0x24   :  { %697 = vmatprep.subr.bf16.mxu0 %v795_v55 }
  0x26   :  { %403 = vmatpush1.bf16.msra.mxu1 %v771_v38 }
  0x27   :  { %404 = vmatprep.subr.bf16.mxu1 %v772_v39  ;;  %698 = vmatpush3.bf16.msra.mxu0 %v796_v56 }
  0x28   :  { %699 = vmatprep.subr.bf16.mxu0 %v797_v57 }
  0x2a   :  { %405 = vmatpush1.bf16.msra.mxu1 %v774_v40 }
  0x2b   :  { %406 = vmatprep.subr.bf16.mxu1 %v775_v41  ;;  %700 = vmatpush3.bf16.msra.mxu0 %v798_v58  ;;  %v608_v41 = vstv %s1090_s0 }
  0x2c   :  { %701 = vmatprep.subr.bf16.mxu0 %v799_v59 }
  0x2e   :  { %407 = vmatpush1.bf16.msra.mxu1 %v777_v42 }
  0x2f   :  { %408 = vmatprep.subr.bf16.mxu1 %v778_v43  ;;  %702 = vmatpush3.bf16.msra.mxu0 %v800_v60 }
  0x30   :  { %703 = vmatprep.subr.bf16.mxu0 %v801_v61 }
  0x32   :  { %409 = vmatpush1.bf16.msra.mxu1 %v780_v44 }
  0x33   :  { %410 = vmatprep.subr.bf16.mxu1 %v781_v45  ;;  %704 = vmatpush3.bf16.msra.mxu0 %v802_v62 }
  0x34   :  { %705 = vmatprep.subr.bf16.mxu0 %v803_v63 }
  0x36   :  { %411 = vmatpush1.bf16.msra.mxu1 %v783_v46 }
  0x37   :  { %412 = vmatprep.subr.bf16.mxu1 %v784_v47  ;;  %706 = vmatpush3.bf16.msra.mxu0 %v804_v0 }
  0x38   :  { %707 = vmatprep.subr.bf16.mxu0 %v805_v17 }
  0x3a   :  { %413 = vmatpush1.bf16.msra.mxu1 %v786_v48 }
  0x3b   :  { %414 = vmatprep.subr.bf16.mxu1 %v787_v49  ;;  %708 = vmatpush3.bf16.msra.mxu0 %v806_v18 }
  0x3c   :  { %709 = vmatprep.subr.bf16.mxu0 %v807_v19 }
  0x3e   :  { %415 = vmatpush1.bf16.msra.mxu1 %v789_v50 }
  0x3f   :  { %416 = vmatprep.subr.bf16.mxu1 %v790_v51  ;;  %710 = vmatpush3.bf16.msra.mxu0 %v808_v20 }
  0x42   :  { %417 = vmatpush1.bf16.msra.mxu1 %v792_v52 }
  0xf5   :  { %v171_v7 = vpop.f32.mrb[0].mxu0 }
  0xf6   :  { %v172_v8 = vadd.f32 %v171_v7, %v50_v5  ;;  %v173_v9 = vpop.f32.mrb[1].mxu0 }
  0xf7   :  { %v174_v10 = vadd.f32 %v173_v9, %v54_v6  ;;  %v175_v11 = vpop.f32.mrb[2].mxu0 }
  0xf8   :  { %v178_v12 = vmax.f32 %v172_v8, 0.0  ;;  %v176_v13 = vpop.f32.mrb[3].mxu0 }
  0xf9   :  { %v179_v14 = vmax.f32 %v174_v10, 0.0 }
  0xfa   :  { %v180_v16 = vpack.c.bf16 %v178_v12, %v178_v12 }
  0xfb   :  { %v181_v15 = vpack.c.bf16 %v179_v14, %v179_v14 }
  0xfd   :  { %418 = vmatprep.mubr.bf16.mxu1 %v181_v15 }
  0xfe   :  { %419 = vmatmul.mubr.bf16.vlgmr.msra.gmra.mrb[0].mxu1 %v180_v16 }
 0x1d1   :  { %v420_v24 = vpop.f32.mrb[0].mxu1 }
 0x1d2   :  { %v421_v25 = vadd.f32 %v420_v24, %v219_v22  ;;  %v422_v26 = vpop.f32.mrb[1].mxu1 }
 0x1d3   :  { %v423_v27 = vadd.f32 %v422_v26, %v223_v23  ;;  %v424_v28 = vpop.f32.mrb[2].mxu1 }
 0x1d4   :  { %v427_v29 = vmax.f32 %v421_v25, 0.0  ;;  %v425_v30 = vpop.f32.mrb[3].mxu1 }
 0x1d5   :  { %v428_v31 = vmax.f32 %v423_v27, 0.0 }
 0x1d6   :  { %v429_v33 = vpack.c.bf16 %v427_v29, %v427_v29 }
 0x1d7   :  { %v430_v32 = vpack.c.bf16 %v428_v31, %v428_v31 }
 0x1d9   :  { %598 = vmatprep.mubr.bf16.mxu0 %v430_v32 }
 0x1da   :  { %599 = vmatmul.mubr.bf16.vlgmr.msra.gmra.mrb[4].mxu0 %v429_v33 }
 0x2ad   :  { %v711_v34 = vpop.f32.mrb[4].mxu0 }
 0x2ae   :  { %v712_v36 = vpop.f32.mrb[5].mxu0 }
 0x2af   :  { %v713_v37 = vadd.f32 %v712_v36, %v711_v34  ;;  %v714_v38 = vpop.f32.mrb[6].mxu0 }
 0x2b0   :  { %v715_v39 = vpop.f32.mrb[7].mxu0 }
 0x2b1   :  { %v601_v40 = vadd.f32 %v713_v37, %v678_v35 }
 0x2b3   :  { %809 = vtanh.f32 %v601_v40 }
 0x2bd   :  { %v810_v42 = vpop.eup %809 }
 0x2be   :  { %v609_v43 = vmul.f32 %v810_v42, %v608_v41 }
 0x2c0   :  { %610 = vst [vmem:[#allocation3] sm:$0xff] %v609_v43 }
 0x2c1   :  { %615 = vsyncadd [#allocation4], 96  ;;  %s836_s24 = smov [#allocation3]  }
 0x2c2   :  { %s616_s25 = sshll.u32 %s836_s24, 4  ;;  %s617_s25 = int_to_ptr.vmem [resolvable:$true] %s616_s25 }
 0x2c3   :  { %s811_s2 = scalar_lea.vmem %s617_s25, 32  ;;  %s815_s4 = scalar_lea.vmem %s617_s25, 128 }
 0x2c4   :  { %p812_p0 = scmp.ne.s32.totalorder %s617_s25, %s811_s2  ;;  %p816_p1 = scmp.lt.s32.totalorder %s617_s25, %s617_s25 }
 0x2c5   :  { %p817_p2 = scmp.lt.s32.totalorder %s815_s4, %s811_s2 }
 0x2c7   :  { %p818_p3 = por %p817_p2, %p816_p1 }
 0x2c9   :  { %p819_p4 = pnand %p818_p3, %p812_p0 }
 0x2cb   :  { %822 = shalt.err (!%p819_p4)
}
 0x2cc   :  { %s823_s27 = scalar_lea.hbm %s1095_s5, 32 }
 0x2cd   :  { %p824_p5 = scmp.ne.s32.totalorder %s1095_s5, %s823_s27  ;;  %p827_p6 = scmp.lt.u32.totalorder %s823_s27, %s1095_s5 }
 0x2cf   :  { %p829_p7 = pnand %p827_p6, %p824_p5 }
 0x2d1   :  { %832 = shalt.err (!%p829_p7)
}
 0x2d2   :  { %s837_s6 = smov 32   ;;  %s838_s7 = smov 2  }
 0x2d3   :  { %622 = dma.vmem_to_hbm [thread:$0]  %s617_s25, 32, %s1095_s5, [#allocation4], %s837_s6, %s837_s6, %s838_s7  }
 0x2d4   :  { %833 = dma.done.wait [#allocation4], 128  }
 0x2d5   :  { %834 = vsyncadd [#allocation4], 4294967168 }
 0x2d6   :  { %626 = vsyncpa [#allocation4], 1 }

</bundles_post_ra>
